<compile_context>
chip_gen: v7x
topology: tpu7x:2x2x1
jax: 0.10.0
libtpu: 0.0.40
codegen_flags: <defaults>
</compile_context>

<pallas_src>
import functools

import jax
import jax.numpy as jnp
from jax import lax
from jax.experimental import pallas as pl
from jax.experimental.pallas import tpu as pltpu

TAU = 32.0


def _memory_network_kernel(feat_ref, w_ref, mem_ref, out_ref, *,
                           emb_dim, domain_num, memory_num):
    E, Dn, M = emb_dim, domain_num, memory_num
    DnM = Dn * M

    f = feat_ref[...]
    # L2 row-normalization. torch.norm adds no eps, so none here either
    # (an all-zero row NaNs in both implementations). rsqrt -> EUP slot.
    f = f * lax.rsqrt(jnp.sum(f * f, axis=1, keepdims=True))

    # Fused projection: one MXU push gives [topic | domain] along lanes.
    td = jnp.dot(f, w_ref[...], preferred_element_type=jnp.float32)       # (TB, 2E)
    topic = td[:, :E]
    dom = td[:, E:]

    # Flattened per-domain memory is pre-transposed -> no .T inside the kernel.
    #   scores[b, d*M+m] = tau * (topic[b] . mem[d, m])
    #   proj  [b, d*M+m] =        dom[b]   . mem[d, m]
    scores = jnp.dot(topic, mem_ref[...], preferred_element_type=jnp.float32) * TAU
    proj = jnp.dot(dom, mem_ref[...], preferred_element_type=jnp.float32)  # (TB, Dn*M)

    # Per-domain softmax stabilization: softmax is shift-invariant, and the
    # global row max is constant within every M-lane segment (and >= its
    # segment max), so ONE row-wide max reduction stabilizes all Dn softmaxes.
    row_max = jnp.max(scores, axis=1, keepdims=True)
    e = jnp.exp(scores - row_max)                                          # (TB, Dn*M)

    # Segment-sum over M via a constant one-hot (Dn*M, Dn) matrix (MXU):
    #   num[b, d] = sum_m e * proj ,  den[b, d] = sum_m e ,  sum(sep*dom) == num/den
    row = lax.broadcasted_iota(jnp.int32, (DnM, Dn), 0)
    low = lax.broadcasted_iota(jnp.int32, (DnM, Dn), 1) * M
    s_mat = ((row >= low) & (row < low + M)).astype(jnp.float32)           # (Dn*M, Dn)

    num = jnp.dot(e * proj, s_mat, preferred_element_type=jnp.float32)     # (TB, Dn)
    den = jnp.dot(e, s_mat, preferred_element_type=jnp.float32)            # (TB, Dn)
    domain_att = (num / den) * TAU

    # Final softmax over domains (lane-wise). Exact divide kept: approx
    # reciprocal error would be amplified by tau and break 1e-5 parity.
    domain_att = domain_att - jnp.max(domain_att, axis=1, keepdims=True)
    ee = jnp.exp(domain_att)
    out_ref[...] = ee / jnp.sum(ee, axis=1, keepdims=True)


def memory_network_forward(feature, w_topic, w_domain, memory, *, block_b=256):
    """Pallas implementation of MemoryNetwork.forward.

    Returns (B, 1, domain_num), matching the PyTorch module (for B > 1;
    torch's .squeeze() behaves differently at B == 1).
    """
    B, d_in = feature.shape
    E = w_topic.shape[0]
    Dn, M, _ = memory.shape
    DnM = Dn * M

    # One-time layout prep outside the kernel: fuse + transpose the projection
    # weights and flatten + transpose the memory banks so the kernel never
    # transposes anything.
    w_stacked = jnp.concatenate([w_topic, w_domain], axis=0).T             # (d_in, 2E)
    mem_t = memory.reshape(DnM, E).T                                       # (E, Dn*M)

    tb = B if B <= block_b else block_b
    grid = (pl.cdiv(B, tb),)

    kernel = functools.partial(_memory_network_kernel,
                               emb_dim=E, domain_num=Dn, memory_num=M)

    out = pl.pallas_call(
        kernel,
        out_shape=jax.ShapeDtypeStruct((B, Dn), jnp.float32),
        grid=grid,
        in_specs=[
            pl.BlockSpec((tb, d_in), lambda i: (i, 0)),
            pl.BlockSpec((d_in, 2 * E), lambda i: (0, 0)),
            pl.BlockSpec((E, DnM), lambda i: (0, 0)),
        ],
        out_specs=pl.BlockSpec((tb, Dn), lambda i: (i, 0)),
        compiler_params=pltpu.CompilerParams(dimension_semantics=("parallel",)),
    )(feature.astype(jnp.float32), w_stacked, mem_t)
    return out[:, None, :]


def _reference_forward(feature, w_topic, w_domain, memory):
    """Pure-JAX reference mirroring the PyTorch code."""
    f = feature / jnp.linalg.norm(feature, ord=2, axis=1, keepdims=True)
    topic = f @ w_topic.T
    dom = f @ w_domain.T
    cols = []
    for d in range(memory.shape[0]):
        mem = memory[d]
        att = jax.nn.softmax((topic @ mem.T) * TAU, axis=1)
        sep = att @ mem
        cols.append(jnp.sum(sep * dom, axis=1, keepdims=True))
    domain_att = jnp.concatenate(cols, axis=1)
    return jax.nn.softmax(domain_att * TAU, axis=1)[:, None, :]


if __name__ == "__main__":
    # Small shapes consistent with the module's forward.
    B, input_dim, emb_dim, domain_num, memory_num = 8, 32, 32, 4, 10

    key = jax.random.PRNGKey(0)
    k_feat, k_wt, k_wd, k_mem = jax.random.split(key, 4)

    feature = jax.random.normal(k_feat, (B, input_dim), dtype=jnp.float32)
    # nn.Linear weights: (out_features, in_features).
    w_topic = jax.random.normal(k_wt, (emb_dim, input_dim), dtype=jnp.float32) * 0.1
    w_domain = jax.random.normal(k_wd, (emb_dim, input_dim), dtype=jnp.float32) * 0.1
    # Module inits domain_memory to zeros; use deterministic random values so the
    # softmax read-out is non-degenerate for this synthetic test.
    memory = jax.random.normal(k_mem, (domain_num, memory_num, emb_dim),
                               dtype=jnp.float32) * 0.1

    out = jax.block_until_ready(
        memory_network_forward(feature, w_topic, w_domain, memory))
    ref = jax.block_until_ready(
        _reference_forward(feature, w_topic, w_domain, memory))

    assert out.shape == (B, 1, domain_num), out.shape
    assert jnp.allclose(out, ref, rtol=1e-5, atol=1e-5), (
        "mismatch vs reference:\n%s\n%s" % (out, ref))

    # TODO(synk): MemoryNetwork.write() (stateful memory-bank update) is training-time
    # bookkeeping outside forward; not implemented as a kernel.
    print("KERNEL_OK")
</pallas_src>

<mosaic_0001>
module attributes {stable_mosaic.version = 11 : i64} {
  func.func @_memory_network_kernel(%arg0: i32, %arg1: memref<8x32xf32, #tpu.memory_space<vmem>>, %arg2: memref<32x64xf32, #tpu.memory_space<vmem>>, %arg3: memref<32x40xf32, #tpu.memory_space<vmem>>, %arg4: memref<8x4xf32, #tpu.memory_space<vmem>>) attributes {dimension_semantics = [#tpu.dimension_semantics<parallel>], iteration_bounds = array<i64: 1>, scalar_prefetch = 0 : i64, scratch_operands = 0 : i64, tpu.core_type = #tpu.core_type<tc>, window_params = [{transform_indices = @transform_0, window_bounds = array<i64: 8, 32>}, {pipeline_mode = #tpu.pipeline_mode<synchronous>, transform_indices = @transform_1, window_bounds = array<i64: 32, 64>}, {pipeline_mode = #tpu.pipeline_mode<synchronous>, transform_indices = @transform_2, window_bounds = array<i64: 32, 40>}, {transform_indices = @transform_3, window_bounds = array<i64: 8, 4>}]} {
    %c0 = arith.constant 0 : index
    %c0_0 = arith.constant 0 : index
    %0 = vector.load %arg1[%c0, %c0_0] : memref<8x32xf32, #tpu.memory_space<vmem>>, vector<8x32xf32>
    %1 = arith.mulf %0, %0 : vector<8x32xf32>
    %cst = arith.constant dense<0.000000e+00> : vector<8xf32>
    %2 = vector.multi_reduction <add>, %1, %cst [1] : vector<8x32xf32> to vector<8xf32>
    %3 = vector.shape_cast %2 : vector<8xf32> to vector<8x1xf32>
    %4 = math.rsqrt %3 : vector<8x1xf32>
    %5 = vector.broadcast %4 : vector<8x1xf32> to vector<8x32xf32>
    %6 = arith.mulf %0, %5 : vector<8x32xf32>
    %c0_1 = arith.constant 0 : index
    %c0_2 = arith.constant 0 : index
    %7 = vector.load %arg2[%c0_1, %c0_2] : memref<32x64xf32, #tpu.memory_space<vmem>>, vector<32x64xf32>
    %cst_3 = arith.constant dense<0.000000e+00> : vector<8x64xf32>
    %8 = tpu.matmul %6, %7, %cst_3 {dimension_numbers = #tpu.dot_dimension_numbers<[1], [0], [0], [1], [0, 0, 1, 1], [], []>} : vector<8x32xf32>, vector<32x64xf32>, vector<8x64xf32> -> vector<8x64xf32>
    %9 = vector.extract_strided_slice %8 {offsets = [0, 0], sizes = [8, 32], strides = [1, 1]} : vector<8x64xf32> to vector<8x32xf32>
    %10 = vector.extract_strided_slice %8 {offsets = [0, 32], sizes = [8, 32], strides = [1, 1]} : vector<8x64xf32> to vector<8x32xf32>
    %c0_4 = arith.constant 0 : index
    %c0_5 = arith.constant 0 : index
    %11 = vector.load %arg3[%c0_4, %c0_5] : memref<32x40xf32, #tpu.memory_space<vmem>>, vector<32x40xf32>
    %cst_6 = arith.constant dense<0.000000e+00> : vector<8x40xf32>
    %12 = tpu.matmul %9, %11, %cst_6 {dimension_numbers = #tpu.dot_dimension_numbers<[1], [0], [0], [1], [0, 0, 1, 1], [], []>} : vector<8x32xf32>, vector<32x40xf32>, vector<8x40xf32> -> vector<8x40xf32>
    %cst_7 = arith.constant 3.200000e+01 : f32
    %13 = vector.broadcast %cst_7 : f32 to vector<8x40xf32>
    %14 = arith.mulf %12, %13 : vector<8x40xf32>
    %c0_8 = arith.constant 0 : index
    %c0_9 = arith.constant 0 : index
    %15 = vector.load %arg3[%c0_8, %c0_9] : memref<32x40xf32, #tpu.memory_space<vmem>>, vector<32x40xf32>
    %cst_10 = arith.constant dense<0.000000e+00> : vector<8x40xf32>
    %16 = tpu.matmul %10, %15, %cst_10 {dimension_numbers = #tpu.dot_dimension_numbers<[1], [0], [0], [1], [0, 0, 1, 1], [], []>} : vector<8x32xf32>, vector<32x40xf32>, vector<8x40xf32> -> vector<8x40xf32>
    %cst_11 = arith.constant dense<0xFF800000> : vector<8xf32>
    %17 = vector.multi_reduction <maximumf>, %14, %cst_11 [1] : vector<8x40xf32> to vector<8xf32>
    %18 = vector.shape_cast %17 : vector<8xf32> to vector<8x1xf32>
    %19 = vector.broadcast %18 : vector<8x1xf32> to vector<8x40xf32>
    %20 = arith.subf %14, %19 : vector<8x40xf32>
    %21 = math.exp %20 : vector<8x40xf32>
    %22 = tpu.iota {dimensions = array<i32: 0>} : vector<40x4xi32>
    %23 = tpu.iota {dimensions = array<i32: 1>} : vector<40x4xi32>
    %c10_i32 = arith.constant 10 : i32
    %24 = vector.broadcast %c10_i32 : i32 to vector<40x4xi32>
    %25 = arith.muli %23, %24 : vector<40x4xi32>
    %26 = arith.cmpi sge, %22, %25 : vector<40x4xi32>
    %c10_i32_12 = arith.constant 10 : i32
    %27 = vector.broadcast %c10_i32_12 : i32 to vector<40x4xi32>
    %28 = arith.addi %25, %27 : vector<40x4xi32>
    %29 = arith.cmpi slt, %22, %28 : vector<40x4xi32>
    %30 = arith.andi %26, %29 : vector<40x4xi1>
    %31 = arith.extui %30 : vector<40x4xi1> to vector<40x4xi32>
    %32 = arith.sitofp %31 : vector<40x4xi32> to vector<40x4xf32>
    %33 = arith.mulf %21, %16 : vector<8x40xf32>
    %cst_13 = arith.constant dense<0.000000e+00> : vector<8x4xf32>
    %34 = tpu.matmul %33, %32, %cst_13 {dimension_numbers = #tpu.dot_dimension_numbers<[1], [0], [0], [1], [0, 0, 1, 1], [], []>} : vector<8x40xf32>, vector<40x4xf32>, vector<8x4xf32> -> vector<8x4xf32>
    %cst_14 = arith.constant dense<0.000000e+00> : vector<8x4xf32>
    %35 = tpu.matmul %21, %32, %cst_14 {dimension_numbers = #tpu.dot_dimension_numbers<[1], [0], [0], [1], [0, 0, 1, 1], [], []>} : vector<8x40xf32>, vector<40x4xf32>, vector<8x4xf32> -> vector<8x4xf32>
    %36 = arith.divf %34, %35 : vector<8x4xf32>
    %cst_15 = arith.constant 3.200000e+01 : f32
    %37 = vector.broadcast %cst_15 : f32 to vector<8x4xf32>
    %38 = arith.mulf %36, %37 : vector<8x4xf32>
    %cst_16 = arith.constant dense<0xFF800000> : vector<8xf32>
    %39 = vector.multi_reduction <maximumf>, %38, %cst_16 [1] : vector<8x4xf32> to vector<8xf32>
    %40 = vector.shape_cast %39 : vector<8xf32> to vector<8x1xf32>
    %41 = vector.broadcast %40 : vector<8x1xf32> to vector<8x4xf32>
    %42 = arith.subf %38, %41 : vector<8x4xf32>
    %43 = math.exp %42 : vector<8x4xf32>
    %cst_17 = arith.constant dense<0.000000e+00> : vector<8xf32>
    %44 = vector.multi_reduction <add>, %43, %cst_17 [1] : vector<8x4xf32> to vector<8xf32>
    %45 = vector.shape_cast %44 : vector<8xf32> to vector<8x1xf32>
    %46 = vector.broadcast %45 : vector<8x1xf32> to vector<8x4xf32>
    %47 = arith.divf %43, %46 : vector<8x4xf32>
    %c0_18 = arith.constant 0 : index
    %c0_19 = arith.constant 0 : index
    %48 = vector.load %arg4[%c0_18, %c0_19] : memref<8x4xf32, #tpu.memory_space<vmem>>, vector<8x4xf32>
    tpu.vector_store %arg4[%c0_18, %c0_19], %47 {strides = array<i32>} : memref<8x4xf32, #tpu.memory_space<vmem>>, vector<8x4xf32>,
    return
  }
  func.func @transform_0(%arg0: i32) -> (i32, i32) {
    %c0_i32 = arith.constant 0 : i32
    %c0_i32_0 = arith.constant 0 : i32
    return %arg0, %c0_i32 : i32, i32
  }
  func.func @transform_1(%arg0: i32) -> (i32, i32) {
    %c0_i32 = arith.constant 0 : i32
    %c0_i32_0 = arith.constant 0 : i32
    %c0_i32_1 = arith.constant 0 : i32
    return %c0_i32, %c0_i32_0 : i32, i32
  }
  func.func @transform_2(%arg0: i32) -> (i32, i32) {
    %c0_i32 = arith.constant 0 : i32
    %c0_i32_0 = arith.constant 0 : i32
    %c0_i32_1 = arith.constant 0 : i32
    return %c0_i32, %c0_i32_0 : i32, i32
  }
  func.func @transform_3(%arg0: i32) -> (i32, i32) {
    %c0_i32 = arith.constant 0 : i32
    %c0_i32_0 = arith.constant 0 : i32
    return %arg0, %c0_i32 : i32, i32
  }
}

</mosaic_0001>

<bundles_post_ra>
// kernel: tpu_custom_call.1
= control target key start
LH: loop header
LB: loop body
LE: loop exit
PB: predicated region body
PF: predicated region fallthrough
CT: control target
= control target key end

     0   :  { %8 = vsyncpa [#allocation3], 0  ;;  %s833_s0 = inlined_call_operand.hbm [shape: f32[8,32], index: 0, kind: input, shape index: {}]   ;;  %s834_s1 = inlined_call_operand.hbm [shape: f32[32,64], index: 1, kind: input, shape index: {}]   ;;  %s835_s2 = inlined_call_operand.hbm [shape: f32[32,40], index: 2, kind: input, shape index: {}]   ;;  %s836_s3 = inlined_call_operand.vmem [shape: f32[8,4], index: 3, kind: output, shape index: {}]  }
   0x1   :  { %9 = vsyncpa [#allocation5], 0  ;;  %s728_s12 = smov [#allocation4]   ;;  %s658_s16 = scalar_lea.hbm %s834_s1, 512 }
   0x2   :  { %s25_s13 = sshll.u32 %s728_s12, 4  ;;  %p659_p0 = scmp.ne.s32.totalorder %s834_s1, %s658_s16  ;;  %s26_s13 = int_to_ptr.vmem [resolvable:$true] %s25_s13 }
   0x3   :  { %p662_p1 = scmp.lt.u32.totalorder %s658_s16, %s834_s1 }
   0x5   :  { %p664_p2 = pnand %p662_p1, %p659_p0 }
   0x7   :  { %667 = shalt.err (!%p664_p2)
}
   0x8   :  { %s668_s21 = scalar_lea.vmem %s26_s13, 512  ;;  %p673_p4 = scmp.lt.s32.totalorder %s26_s13, %s26_s13 }
   0x9   :  { %p669_p3 = scmp.ne.s32.totalorder %s26_s13, %s668_s21  ;;  %p674_p5 = scmp.lt.s32.totalorder %s668_s21, %s668_s21 }
   0xb   :  { %p675_p6 = por %p674_p5, %p673_p4 }
   0xd   :  { %p676_p7 = pnand %p675_p6, %p669_p3 }
   0xf   :  { %679 = shalt.err (!%p676_p7)
}
  0x10   :  { %s729_s22 = smov 128   ;;  %s730_s23 = smov 8  }
  0x11   :  { %31 = dma.hbm_to_vmem [thread:$0]  %s834_s1, 512, %s26_s13, [#allocation5], %s729_s22, %s729_s22, %s730_s23  }
  0x12   :  { %s731_s26 = smov [#allocation2]   ;;  %s732_s28 = smov [#allocation6]  }
  0x13   :  { %s16_s27 = sshll.u32 %s731_s26, 4  ;;  %s37_s29 = sshll.u32 %s732_s28, 4  ;;  %s17_s27 = int_to_ptr.vmem [resolvable:$true] %s16_s27  ;;  %s38_s29 = int_to_ptr.vmem [resolvable:$true] %s37_s29 }
  0x14   :  { %s680_s5 = scalar_lea.hbm %s833_s0, 128 }
  0x15   :  { %p681_p8 = scmp.ne.s32.totalorder %s833_s0, %s680_s5  ;;  %p684_p9 = scmp.lt.u32.totalorder %s680_s5, %s833_s0 }
  0x17   :  { %p686_p10 = pnand %p684_p9, %p681_p8 }
  0x19   :  { %689 = shalt.err (!%p686_p10)
}
  0x1a   :  { %s690_s1 = scalar_lea.vmem %s17_s27, 128  ;;  %p695_p12 = scmp.lt.s32.totalorder %s17_s27, %s17_s27 }
  0x1b   :  { %p691_p11 = scmp.ne.s32.totalorder %s17_s27, %s690_s1  ;;  %p696_p13 = scmp.lt.s32.totalorder %s690_s1, %s690_s1 }
  0x1d   :  { %p697_p0 = por %p696_p13, %p695_p12 }
  0x1f   :  { %p698_p1 = pnand %p697_p0, %p691_p11 }
  0x21   :  { %701 = shalt.err (!%p698_p1)
}
  0x22   :  { %19 = dma.hbm_to_vmem [thread:$0]  %s833_s0, 128, %s17_s27, [#allocation3]  }
  0x23   :  { %s702_s14 = scalar_lea.hbm %s835_s2, 512 }
  0x24   :  { %p703_p2 = scmp.ne.s32.totalorder %s835_s2, %s702_s14  ;;  %p706_p3 = scmp.lt.u32.totalorder %s702_s14, %s835_s2 }
  0x26   :  { %p708_p4 = pnand %p706_p3, %p703_p2 }
  0x28   :  { %711 = shalt.err (!%p708_p4)
}
  0x29   :  { %s712_s19 = scalar_lea.vmem %s38_s29, 512  ;;  %p717_p6 = scmp.lt.s32.totalorder %s38_s29, %s38_s29 }
  0x2a   :  { %p713_p5 = scmp.ne.s32.totalorder %s38_s29, %s712_s19  ;;  %p718_p7 = scmp.lt.s32.totalorder %s712_s19, %s712_s19 }
  0x2c   :  { %p719_p8 = por %p718_p7, %p717_p6 }
  0x2e   :  { %p720_p9 = pnand %p719_p8, %p713_p5 }
  0x30   :  { %723 = shalt.err (!%p720_p9)
}
  0x31   :  { %43 = dma.hbm_to_vmem [thread:$0]  %s835_s2, 512, %s38_s29, [#allocation5], %s729_s22, %s729_s22, %s730_s23  }
  0x32   :  { %724 = dma.done.wait [#allocation3], 128  }
  0x33   :  { %725 = vsyncadd [#allocation3], 4294967168 }
  0x34   :  { %726 = dma.done.wait [#allocation5], 1024  }
  0x35   :  { %727 = vsyncadd [#allocation5], 4294966272  ;;  %v53_v0 = vld [vmem:[#allocation2] sm:$0xff]  ;;  %vm55_vm0 = vcmask 261120   ;;  %v61_v3 = vld [vmem:[#allocation4] sm:$0xff]  ;;  %v733_v6 = vmov 0.0|0.0   ;;  %v297_v27 = vlaneseq }
  0x36   :  { %v54_v1 = vmul.f32 %v53_v0, %v53_v0  ;;  %v62_v4 = vld [vmem:[#allocation4 + $0x8] sm:$0xff]  ;;  %v63_v5 = vld [vmem:[#allocation4 + $0x10] sm:$0xff]  ;;  %607 = vmatprep.subr.bf16.mxu0 %v733_v6  ;;  %v64_v8 = vld [vmem:[#allocation4 + $0x18] sm:$0xff]  ;;  %vm734_vm1 = vmmov 0   ;;  %v735_v9 = vmov 0.0   ;;  %613 = vmatprep.subr.bf16.mxu1 %v733_v6  ;;  %s736_s2 = smov 96  }
  0x37   :  { %v608_v7 = vpack.c.bf16 %v62_v4, %v61_v3  ;;  %556 = vmatprep.mubr.msk.f32.mxu0 %vm734_vm1, %v735_v9  ;;  %567 = vmatprep.mubr.msk.f32.mxu1 %vm734_vm1, %v735_v9  ;;  %v611_v10 = vpack.c.bf16 %v64_v8, %v63_v5  ;;  %v138_v11 = vld [vmem:[#allocation6] sm:$0xff]  ;;  %v139_v12 = vld [vmem:[#allocation6 + $0x8] sm:$0xff]  ;;  %v140_v13 = vld [vmem:[#allocation6 + $0x10] sm:$0xff]  ;;  %vm290_vm2 = vcmask 326656   ;;  %v304_v28 = vand.u32 127, %v297_v27 }
  0x38   :  { %v56_v2 = vsel %vm55_vm0, %v54_v1, 0.0  ;;  %v614_v14 = vpack.c.bf16 %v139_v12, %v138_v11  ;;  %v141_v15 = vld [vmem:[#allocation6 + $0x18] sm:$0xff]  ;;  %v298_v29 = vshrl.u32 %v297_v27, 7  ;;  %v737_v36 = vmov 1.0|1.0  }
  0x39   :  { %57 = vadd.xlane.f32.xlu0 %v56_v2  ;;  %609 = vmatpush3.bf16.msra.mxu0 %v608_v7  ;;  %v617_v16 = vpack.c.bf16 %v141_v15, %v140_v13  ;;  %v305_v30 = vmul.u32 10, %v304_v28  ;;  %v738_v37 = vmov 1.0  }
  0x3a   :  { %610 = vmatprep.subr.bf16.mxu0 %v733_v6  ;;  %615 = vmatpush3.bf16.msra.mxu1 %v614_v14  ;;  %v299_v31 = vadd.s32 8, %v298_v29  ;;  %v300_v33 = vadd.s32 16, %v298_v29  ;;  %v301_v34 = vadd.s32 24, %v298_v29  ;;  %v302_v35 = vadd.s32 32, %v298_v29 }
  0x3b   :  { %616 = vmatprep.subr.bf16.mxu1 %v733_v6  ;;  %v311_v32 = vadd.s32 10, %v305_v30  ;;  %vm306_vm3 = vcmp.ge.s32.totalorder %v298_v29, %v305_v30 }
  0x3c   :  { %vm307_vm4 = vcmp.ge.s32.totalorder %v299_v31, %v305_v30  ;;  %vm308_vm10 = vcmp.ge.s32.totalorder %v300_v33, %v305_v30  ;;  %vm309_vm11 = vcmp.ge.s32.totalorder %v301_v34, %v305_v30 }
  0x3d   :  { %612 = vmatpush3.bf16.msra.mxu0 %v611_v10  ;;  %vm312_vm5 = vcmp.lt.s32.totalorder %v298_v29, %v311_v32  ;;  %vm313_vm6 = vcmp.lt.s32.totalorder %v299_v31, %v311_v32  ;;  %vm314_vm12 = vcmp.lt.s32.totalorder %v300_v33, %v311_v32  ;;  %vm315_vm13 = vcmp.lt.s32.totalorder %v301_v34, %v311_v32 }
  0x3e   :  { %619 = vmatprep.subr.bf16.mxu0 %v733_v6  ;;  %618 = vmatpush3.bf16.msra.mxu1 %v617_v16  ;;  %vm317_vm7 = vmand %vm306_vm3, %vm312_vm5  ;;  %vm316_vm3 = vcmp.lt.s32.totalorder %v302_v35, %v311_v32  ;;  %vm482_vm5 = vcmask 31744  }
  0x3f   :  { %625 = vmatprep.subr.bf16.mxu1 %v733_v6  ;;  %vm318_vm8 = vmand %vm307_vm4, %vm313_vm6 }
  0x40   :  { %vm626_vm9 = vmpackc.low %vm318_vm8, %vm317_vm7 }
  0x41   :  { %vm319_vm14 = vmand %vm308_vm10, %vm314_vm12 }
  0x42   :  { %vm320_vm15 = vmand %vm309_vm11, %vm315_vm13 }
  0xc6   :  { %v58_v17 = vpop.xlane.xlu0 %57 }
  0xc7   :  { %648 = vrsqrt.f32 %v58_v17 }
  0xd1   :  { %v649_v18 = vpop.eup %648 }
  0xd2   :  { %v60_v19 = vmul.f32 %v649_v18, %v53_v0 }
  0xd4   :  { %557 = vmatmul.mubr.msk.f32.vlgmr.msra.gmra.mrb[0].mxu0 %vm55_vm0, %v60_v19 }
  0xd5   :  { %621 = vmatpush3.bf16.msra.mxu0 %v614_v14  ;;  %578 = vmatprep.mubr.msk.f32.mxu0 %vm734_vm1, %v735_v9 }
  0xd6   :  { %622 = vmatprep.subr.bf16.mxu0 %v733_v6 }
  0xd9   :  { %624 = vmatpush3.bf16.msra.mxu0 %v617_v16 }
  0xda   :  { %631 = vmatprep.subr.bf16.mxu0 %v733_v6 }
 0x1a7   :  { %v134_v20 = vpop.f32.mrb[0].mxu0 }
 0x1a8   :  { %216 = vrot.lane.b32.xlu0 %v134_v20, %s736_s2  ;;  %v558_v21 = vpop.f32.mrb[1].mxu0  ;;  %568 = vmatmul.mubr.msk.f32.vlgmr.msra.gmra.mrb[0].mxu1 %vm55_vm0, %v134_v20 }
 0x1a9   :  { %591 = vmatprep.mubr.msk.f32.mxu1 %vm734_vm1, %v735_v9  ;;  %627 = vmatpush3.bf16.msk.msra.mxu1 %vm626_vm9, %v737_v36 }
 0x1aa   :  { %628 = vmatprep.subr.bf16.mxu1 %v733_v6 }
 0x21a   :  { %v217_v22 = vpop.permute.xlu0 %216 }
 0x21b   :  { %579 = vmatmul.mubr.msk.f32.vlgmr.msra.gmra.mrb[2].mxu0 %vm55_vm0, %v217_v22  ;;  %vm629_vm0 = vmpackc.low %vm320_vm15, %vm319_vm14 }
 0x21c   :  { %604 = vmatprep.mubr.msk.f32.mxu0 %vm734_vm1, %v735_v9  ;;  %633 = vmatpush3.bf16.msk.msra.mxu0 %vm626_vm9, %v737_v36  ;;  %vm310_vm1 = vcmp.ge.s32.totalorder %v302_v35, %v305_v30 }
 0x21d   :  { %634 = vmatprep.subr.bf16.mxu0 %v733_v6  ;;  %630 = vmatpush3.bf16.msk.msra.mxu1 %vm629_vm0, %v737_v36  ;;  %vm321_vm4 = vmand %vm310_vm1, %vm316_vm3 }
 0x21e   :  { %589 = vmatprep.subr.mxu1 %v735_v9 }
 0x220   :  { %636 = vmatpush3.bf16.msk.msra.mxu0 %vm629_vm0, %v737_v36 }
 0x221   :  { %602 = vmatprep.subr.mxu0 %v735_v9  ;;  %590 = vmatpush3.msk.msra.mxu1 %vm321_vm4, %v738_v37 }
 0x224   :  { %603 = vmatpush3.msk.msra.mxu0 %vm321_vm4, %v738_v37 }
 0x27b   :  { %v211_v23 = vpop.f32.mrb[0].mxu1 }
 0x27c   :  { %v215_v24 = vmul.f32 32.0, %v211_v23  ;;  %v569_v25 = vpop.f32.mrb[1].mxu1 }
 0x27e   :  { %v291_v26 = vsel %vm290_vm2, %v215_v24, -inf }
 0x27f   :  { %292 = vmax.xlane.f32.xlu1 %v291_v26 }
 0x2ee   :  { %v286_v38 = vpop.f32.mrb[2].mxu0 }
 0x2ef   :  { %v580_v39 = vpop.f32.mrb[3].mxu0 }
 0x30c   :  { %v293_v40 = vpop.xlane.xlu1 %292 }
 0x30d   :  { %v294_v41 = vsub.f32 %v215_v24, %v293_v40 }
 0x30f   :  { %v295_v42 = vmul.f32 1.442695, %v294_v41 }
 0x311   :  { %650 = vpow2.f32 %v295_v42 }
 0x31b   :  { %v651_v43 = vpop.eup %650 }
 0x31c   :  { %605 = vmatmul.mubr.msk.f32.vlgmr.msra.gmra.mrb[4].mxu0 %vm290_vm2, %v651_v43  ;;  %v332_v44 = vmul.f32 %v651_v43, %v286_v38 }
 0x31e   :  { %592 = vmatmul.mubr.msk.f32.vlgmr.msra.gmra.mrb[2].mxu1 %vm290_vm2, %v332_v44 }
 0x3ef   :  { %v475_v45 = vpop.f32.mrb[4].mxu0 }
 0x3f0   :  { %652 = vrcp.f32 %v475_v45  ;;  %v606_v46 = vpop.f32.mrb[5].mxu0 }
 0x3f1   :  { %v402_v47 = vpop.f32.mrb[2].mxu1 }
 0x3f2   :  { %v593_v48 = vpop.f32.mrb[3].mxu1 }
 0x3fa   :  { %v653_v49 = vpop.eup %652 }
 0x3fb   :  { %v480_v50 = vmul.f32 %v653_v49, %v402_v47 }
 0x3fd   :  { %v481_v51 = vmul.f32 32.0, %v480_v50 }
 0x3ff   :  { %v483_v52 = vsel %vm482_vm5, %v481_v51, -inf }
 0x400   :  { %484 = vmax.xlane.f32.xlu1 %v483_v52 }
 0x48d   :  { %v485_v53 = vpop.xlane.xlu1 %484 }
 0x48e   :  { %v486_v54 = vsub.f32 %v481_v51, %v485_v53 }
 0x490   :  { %v487_v55 = vmul.f32 1.442695, %v486_v54 }
 0x492   :  { %654 = vpow2.f32 %v487_v55 }
 0x49c   :  { %v655_v56 = vpop.eup %654 }
 0x49d   :  { %v489_v57 = vsel %vm482_vm5, %v655_v56, 0.0 }
 0x49e   :  { %490 = vadd.xlane.f32.xlu1 %v489_v57 }
 0x52b   :  { %v491_v58 = vpop.xlane.xlu1 %490 }
 0x52c   :  { %656 = vrcp.f32 %v491_v58 }
 0x536   :  { %v657_v59 = vpop.eup %656 }
 0x537   :  { %v493_v60 = vmul.f32 %v657_v59, %v655_v56 }
 0x539   :  { %494 = vst.msk [vmem:[%s836_s3] sm:$0xff] %vm482_vm5, %v493_v60 }
 0x53a   :  { %499 = vsyncpa [#allocation3], 1 }
 0x53b   :  { %500 = vsyncpa [#allocation5], 1 }

</bundles_post_ra>
